<compile_context>
chip_gen: v6e
topology: v6e:2x2x1
jax: 0.10.0
libtpu: 0.0.40
codegen_flags: <defaults>
</compile_context>

<pallas_src>
import functools

import jax
import jax.numpy as jnp
from jax.experimental import pallas as pl
from jax.experimental.pallas import tpu as pltpu

LANE = 128
SUBLANE = 8


def _round_up(n, m):
    return ((n + m - 1) // m) * m


def critic_kernel(x_ref, w1_ref, b1_ref, w2_ref, b2_ref, w3_ref, b3_ref, out_ref):
    """One batch tile of the 3-layer MLP; every last dim is 128-padded."""
    # fc1 + ReLU  (bf16 MXU operands, f32 accumulation, f32 bias/ReLU)
    x = x_ref[...].astype(jnp.bfloat16)
    h1 = jnp.dot(x, w1_ref[...], preferred_element_type=jnp.float32)
    h1 = jnp.maximum(h1 + b1_ref[...], 0.0)
    # fc2 + ReLU
    h2 = jnp.dot(h1.astype(jnp.bfloat16), w2_ref[...],
                 preferred_element_type=jnp.float32)
    h2 = jnp.maximum(h2 + b2_ref[...], 0.0)
    # fc3 (value head, no activation) -> lane-dense padded output block
    v = jnp.dot(h2.astype(jnp.bfloat16), w3_ref[...],
                preferred_element_type=jnp.float32)
    out_ref[...] = (v + b3_ref[...]).astype(out_ref.dtype)


def pad_params(params, n_states, hidden, n_actions, matmul_dtype=jnp.bfloat16):
    """Zero-pad all feature dims to multiples of 128; cast weights to bf16."""
    w1, b1, w2, b2, w3, b3 = params
    S_p = _round_up(n_states, LANE)
    H_p = _round_up(hidden, LANE)
    A_p = _round_up(n_actions, LANE)

    def pad_w(w, rp, cp):
        r, c = w.shape
        return jnp.pad(w, ((0, rp - r), (0, cp - c))).astype(matmul_dtype)

    def pad_b(b, cp):
        return jnp.pad(b, ((0, 0), (0, cp - b.shape[1]))).astype(jnp.float32)

    return (pad_w(w1, S_p, H_p), pad_b(b1, H_p),
            pad_w(w2, H_p, H_p), pad_b(b2, H_p),
            pad_w(w3, H_p, A_p), pad_b(b3, A_p))


@functools.partial(jax.jit, static_argnames=("n_actions", "block_batch"))
def critic_forward(x, padded_params, *, n_actions, block_batch=128):
    """x: [B, n_states] float32 -> value: [B, n_actions] float32."""
    w1, b1, w2, b2, w3, b3 = padded_params
    B, S = x.shape
    S_p = w1.shape[0]
    A_p = w3.shape[1]

    # Single resident block when B is small; pipelined batch grid when large.
    TB = B if B <= block_batch else block_batch
    TB = _round_up(TB, SUBLANE)
    B_p = _round_up(B, TB)
    nb = B_p // TB

    x_p = jnp.pad(x.astype(jnp.float32), ((0, B_p - B), (0, S_p - S)))

    def weight_spec(shape):
        # Full-array block, constant index -> stays VMEM-resident across steps.
        return pl.BlockSpec(shape, lambda i: (0, 0))

    out_p = pl.pallas_call(
        critic_kernel,
        out_shape=jax.ShapeDtypeStruct((B_p, A_p), jnp.float32),
        grid=(nb,),
        in_specs=[
            pl.BlockSpec((TB, S_p), lambda i: (i, 0)),   # x tiled over batch
            weight_spec(w1.shape), weight_spec(b1.shape),
            weight_spec(w2.shape), weight_spec(b2.shape),
            weight_spec(w3.shape), weight_spec(b3.shape),
        ],
        out_specs=pl.BlockSpec((TB, A_p), lambda i: (i, 0)),
        compiler_params=pltpu.CompilerParams(
            dimension_semantics=("parallel",)),  # v7x: shard batch over 2 TCs
    )(x_p, w1, b1, w2, b2, w3, b3)

    return out_p[:B, :n_actions]


def init_linear(key, fan_in, fan_out):
    """Mirrors PyTorch nn.Linear default init (U[-1/sqrt(fan_in), 1/sqrt(fan_in)]).

    Stored as [in, out] (transposed vs. PyTorch's [out, in]) so the kernel
    computes x @ W directly; bias kept 2-D [1, out] for TPU layout."""
    kw, kb = jax.random.split(key)
    bound = 1.0 / jnp.sqrt(jnp.float32(fan_in))
    w = jax.random.uniform(kw, (fan_in, fan_out), jnp.float32, -bound, bound)
    b = jax.random.uniform(kb, (1, fan_out), jnp.float32, -bound, bound)
    return w, b


if __name__ == "__main__":
    # CartPole-like config: n_states=4, n_actions=2, critic_hidden_dim=64.
    n_states, n_actions, hidden = 4, 2, 64

    key = jax.random.PRNGKey(0)
    k_x_small, k_x_large, k1, k2, k3 = jax.random.split(key, 5)

    w1, b1 = init_linear(k1, n_states, hidden)
    w2, b2 = init_linear(k2, hidden, hidden)
    w3, b3 = init_linear(k3, hidden, n_actions)
    params = (w1, b1, w2, b2, w3, b3)
    padded_params = pad_params(params, n_states, hidden, n_actions)

    def ref_f32(x):
        h1 = jnp.maximum(x @ w1 + b1, 0.0)
        h2 = jnp.maximum(h1 @ w2 + b2, 0.0)
        return h2 @ w3 + b3

    def ref_bf16(x):
        # Matches the kernel's precision: bf16 MXU operands, f32 accumulation.
        bf = jnp.bfloat16
        h1 = jnp.maximum(
            jnp.dot(x.astype(bf), w1.astype(bf),
                    preferred_element_type=jnp.float32) + b1, 0.0)
        h2 = jnp.maximum(
            jnp.dot(h1.astype(bf), w2.astype(bf),
                    preferred_element_type=jnp.float32) + b2, 0.0)
        return jnp.dot(h2.astype(bf), w3.astype(bf),
                       preferred_element_type=jnp.float32) + b3

    # Exercise both the single-block path (B=8) and the batch-grid path (B=256).
    for bsz, kx in ((8, k_x_small), (256, k_x_large)):
        x = jax.random.normal(kx, (bsz, n_states), jnp.float32)
        value = jax.block_until_ready(
            critic_forward(x, padded_params, n_actions=n_actions))
        assert value.shape == (bsz, n_actions)
        # Tight check vs. a precision-matched reference.
        assert jnp.allclose(value, ref_bf16(x), atol=1e-3, rtol=1e-3)
        # Loose check vs. the full-f32 PyTorch-equivalent forward.
        assert jnp.allclose(value, ref_f32(x), atol=5e-2, rtol=5e-2)

    print("KERNEL_OK")
</pallas_src>

<mosaic_0001>
module attributes {stable_mosaic.version = 11 : i64} {
  func.func @critic_kernel(%arg0: i32, %arg1: memref<8x128xf32, #tpu.memory_space<vmem>>, %arg2: memref<128x128xbf16, #tpu.memory_space<vmem>>, %arg3: memref<1x128xf32, #tpu.memory_space<vmem>>, %arg4: memref<128x128xbf16, #tpu.memory_space<vmem>>, %arg5: memref<1x128xf32, #tpu.memory_space<vmem>>, %arg6: memref<128x128xbf16, #tpu.memory_space<vmem>>, %arg7: memref<1x128xf32, #tpu.memory_space<vmem>>, %arg8: memref<8x128xf32, #tpu.memory_space<vmem>>) attributes {dimension_semantics = [#tpu.dimension_semantics<parallel>], iteration_bounds = array<i64: 1>, scalar_prefetch = 0 : i64, scratch_operands = 0 : i64, tpu.core_type = #tpu.core_type<tc>, window_params = [{transform_indices = @transform_0, window_bounds = array<i64: 8, 128>}, {pipeline_mode = #tpu.pipeline_mode<synchronous>, transform_indices = @transform_1, window_bounds = array<i64: 128, 128>}, {pipeline_mode = #tpu.pipeline_mode<synchronous>, transform_indices = @transform_2, window_bounds = array<i64: 1, 128>}, {pipeline_mode = #tpu.pipeline_mode<synchronous>, transform_indices = @transform_3, window_bounds = array<i64: 128, 128>}, {pipeline_mode = #tpu.pipeline_mode<synchronous>, transform_indices = @transform_4, window_bounds = array<i64: 1, 128>}, {pipeline_mode = #tpu.pipeline_mode<synchronous>, transform_indices = @transform_5, window_bounds = array<i64: 128, 128>}, {pipeline_mode = #tpu.pipeline_mode<synchronous>, transform_indices = @transform_6, window_bounds = array<i64: 1, 128>}, {transform_indices = @transform_7, window_bounds = array<i64: 8, 128>}]} {
    %c0 = arith.constant 0 : index
    %c0_0 = arith.constant 0 : index
    %0 = vector.load %arg1[%c0, %c0_0] : memref<8x128xf32, #tpu.memory_space<vmem>>, vector<8x128xf32>
    %1 = arith.truncf %0 : vector<8x128xf32> to vector<8x128xbf16>
    %c0_1 = arith.constant 0 : index
    %c0_2 = arith.constant 0 : index
    %2 = vector.load %arg2[%c0_1, %c0_2] : memref<128x128xbf16, #tpu.memory_space<vmem>>, vector<128x128xbf16>
    %cst = arith.constant dense<0.000000e+00> : vector<8x128xf32>
    %3 = tpu.matmul %1, %2, %cst {dimension_numbers = #tpu.dot_dimension_numbers<[1], [0], [0], [1], [0, 0, 1, 1], [], []>} : vector<8x128xbf16>, vector<128x128xbf16>, vector<8x128xf32> -> vector<8x128xf32>
    %c0_3 = arith.constant 0 : index
    %c0_4 = arith.constant 0 : index
    %4 = vector.load %arg3[%c0_3, %c0_4] : memref<1x128xf32, #tpu.memory_space<vmem>>, vector<1x128xf32>
    %5 = vector.broadcast %4 : vector<1x128xf32> to vector<8x128xf32>
    %6 = arith.addf %3, %5 : vector<8x128xf32>
    %cst_5 = arith.constant 0.000000e+00 : f32
    %7 = vector.broadcast %cst_5 : f32 to vector<8x128xf32>
    %8 = arith.maximumf %6, %7 : vector<8x128xf32>
    %9 = arith.truncf %8 : vector<8x128xf32> to vector<8x128xbf16>
    %c0_6 = arith.constant 0 : index
    %c0_7 = arith.constant 0 : index
    %10 = vector.load %arg4[%c0_6, %c0_7] : memref<128x128xbf16, #tpu.memory_space<vmem>>, vector<128x128xbf16>
    %cst_8 = arith.constant dense<0.000000e+00> : vector<8x128xf32>
    %11 = tpu.matmul %9, %10, %cst_8 {dimension_numbers = #tpu.dot_dimension_numbers<[1], [0], [0], [1], [0, 0, 1, 1], [], []>} : vector<8x128xbf16>, vector<128x128xbf16>, vector<8x128xf32> -> vector<8x128xf32>
    %c0_9 = arith.constant 0 : index
    %c0_10 = arith.constant 0 : index
    %12 = vector.load %arg5[%c0_9, %c0_10] : memref<1x128xf32, #tpu.memory_space<vmem>>, vector<1x128xf32>
    %13 = vector.broadcast %12 : vector<1x128xf32> to vector<8x128xf32>
    %14 = arith.addf %11, %13 : vector<8x128xf32>
    %cst_11 = arith.constant 0.000000e+00 : f32
    %15 = vector.broadcast %cst_11 : f32 to vector<8x128xf32>
    %16 = arith.maximumf %14, %15 : vector<8x128xf32>
    %17 = arith.truncf %16 : vector<8x128xf32> to vector<8x128xbf16>
    %c0_12 = arith.constant 0 : index
    %c0_13 = arith.constant 0 : index
    %18 = vector.load %arg6[%c0_12, %c0_13] : memref<128x128xbf16, #tpu.memory_space<vmem>>, vector<128x128xbf16>
    %cst_14 = arith.constant dense<0.000000e+00> : vector<8x128xf32>
    %19 = tpu.matmul %17, %18, %cst_14 {dimension_numbers = #tpu.dot_dimension_numbers<[1], [0], [0], [1], [0, 0, 1, 1], [], []>} : vector<8x128xbf16>, vector<128x128xbf16>, vector<8x128xf32> -> vector<8x128xf32>
    %c0_15 = arith.constant 0 : index
    %c0_16 = arith.constant 0 : index
    %20 = vector.load %arg7[%c0_15, %c0_16] : memref<1x128xf32, #tpu.memory_space<vmem>>, vector<1x128xf32>
    %21 = vector.broadcast %20 : vector<1x128xf32> to vector<8x128xf32>
    %22 = arith.addf %19, %21 : vector<8x128xf32>
    %c0_17 = arith.constant 0 : index
    %c0_18 = arith.constant 0 : index
    %23 = vector.load %arg8[%c0_17, %c0_18] : memref<8x128xf32, #tpu.memory_space<vmem>>, vector<8x128xf32>
    tpu.vector_store %arg8[%c0_17, %c0_18], %22 {strides = array<i32>} : memref<8x128xf32, #tpu.memory_space<vmem>>, vector<8x128xf32>,
    return
  }
  func.func @transform_0(%arg0: i32) -> (i32, i32) {
    %c0_i32 = arith.constant 0 : i32
    %c0_i32_0 = arith.constant 0 : i32
    return %arg0, %c0_i32 : i32, i32
  }
  func.func @transform_1(%arg0: i32) -> (i32, i32) {
    %c0_i32 = arith.constant 0 : i32
    %c0_i32_0 = arith.constant 0 : i32
    %c0_i32_1 = arith.constant 0 : i32
    return %c0_i32, %c0_i32_0 : i32, i32
  }
  func.func @transform_2(%arg0: i32) -> (i32, i32) {
    %c0_i32 = arith.constant 0 : i32
    %c0_i32_0 = arith.constant 0 : i32
    %c0_i32_1 = arith.constant 0 : i32
    return %c0_i32, %c0_i32_0 : i32, i32
  }
  func.func @transform_3(%arg0: i32) -> (i32, i32) {
    %c0_i32 = arith.constant 0 : i32
    %c0_i32_0 = arith.constant 0 : i32
    %c0_i32_1 = arith.constant 0 : i32
    return %c0_i32, %c0_i32_0 : i32, i32
  }
  func.func @transform_4(%arg0: i32) -> (i32, i32) {
    %c0_i32 = arith.constant 0 : i32
    %c0_i32_0 = arith.constant 0 : i32
    %c0_i32_1 = arith.constant 0 : i32
    return %c0_i32, %c0_i32_0 : i32, i32
  }
  func.func @transform_5(%arg0: i32) -> (i32, i32) {
    %c0_i32 = arith.constant 0 : i32
    %c0_i32_0 = arith.constant 0 : i32
    %c0_i32_1 = arith.constant 0 : i32
    return %c0_i32, %c0_i32_0 : i32, i32
  }
  func.func @transform_6(%arg0: i32) -> (i32, i32) {
    %c0_i32 = arith.constant 0 : i32
    %c0_i32_0 = arith.constant 0 : i32
    %c0_i32_1 = arith.constant 0 : i32
    return %c0_i32, %c0_i32_0 : i32, i32
  }
  func.func @transform_7(%arg0: i32) -> (i32, i32) {
    %c0_i32 = arith.constant 0 : i32
    %c0_i32_0 = arith.constant 0 : i32
    return %arg0, %c0_i32 : i32, i32
  }
}

</mosaic_0001>

<bundles_post_ra>
// kernel: critic_forward.1
= control target key start
LH: loop header
LB: loop body
LE: loop exit
PB: predicated region body
PF: predicated region fallthrough
CT: control target
= control target key end

     0   :  { %12 = vsyncpa [#allocation3], 0  ;;  %s724_s0 = inlined_call_operand.vmem [shape: f32[8,128], index: 0, kind: input, shape index: {}]   ;;  %s725_s1 = inlined_call_operand.hbm [shape: bf16[128,128], index: 1, kind: input, shape index: {}]   ;;  %s726_s2 = inlined_call_operand.vmem [shape: f32[1,128], index: 2, kind: input, shape index: {}]   ;;  %s727_s3 = inlined_call_operand.hbm [shape: bf16[128,128], index: 3, kind: input, shape index: {}]   ;;  %s728_s4 = inlined_call_operand.vmem [shape: f32[1,128], index: 4, kind: input, shape index: {}]   ;;  %s729_s5 = inlined_call_operand.hbm [shape: bf16[128,128], index: 5, kind: input, shape index: {}]   ;;  %s730_s6 = inlined_call_operand.vmem [shape: f32[1,128], index: 6, kind: input, shape index: {}]   ;;  %s731_s7 = inlined_call_operand.vmem [shape: f32[8,128], index: 7, kind: output, shape index: {}]  }
   0x1   :  { %13 = vsyncpa [#allocation5], 0  ;;  %s623_s24 = smov [#allocation4]   ;;  %s624_s26 = smov [#allocation2]  }
   0x2   :  { %s35_s25 = sshll.u32 %s623_s24, 4  ;;  %s21_s27 = sshll.u32 %s624_s26, 4  ;;  %s36_s25 = int_to_ptr.vmem [resolvable:$true] %s35_s25  ;;  %s22_s27 = int_to_ptr.vmem [resolvable:$true] %s21_s27 }
   0x3   :  { %s567_s28 = scalar_lea.vmem %s36_s25, 1024  ;;  %p572_p1 = scmp.lt.s32.totalorder %s36_s25, %s36_s25 }
   0x4   :  { %p568_p0 = scmp.ne.s32.totalorder %s36_s25, %s567_s28  ;;  %p573_p2 = scmp.lt.s32.totalorder %s567_s28, %s567_s28 }
   0x6   :  { %p574_p3 = por %p573_p2, %p572_p1 }
   0x8   :  { %p575_p4 = pnand %p574_p3, %p568_p0 }
   0xa   :  { %578 = shalt.err (!%p575_p4)
}
   0xb   :  { %s625_s29 = smov 64   ;;  %s626_s30 = smov 4  }
   0xc   :  { %41 = dma.hbm_to_vmem [thread:$0]  %s727_s3, 1024, %s36_s25, [#allocation5], %s625_s29, %s625_s29, %s626_s30  }
   0xd   :  { %s587_s10 = scalar_lea.vmem %s22_s27, 1024  ;;  %p592_p6 = scmp.lt.s32.totalorder %s22_s27, %s22_s27 }
   0xe   :  { %p588_p5 = scmp.ne.s32.totalorder %s22_s27, %s587_s10  ;;  %p593_p7 = scmp.lt.s32.totalorder %s587_s10, %s587_s10 }
  0x10   :  { %p594_p8 = por %p593_p7, %p592_p6 }
  0x12   :  { %p595_p9 = pnand %p594_p8, %p588_p5 }
  0x14   :  { %598 = shalt.err (!%p595_p9)
}
  0x15   :  { %27 = dma.hbm_to_vmem [thread:$0]  %s725_s1, 1024, %s22_s27, [#allocation3], %s625_s29, %s625_s29, %s626_s30  }
  0x16   :  { %s627_s13 = smov [#allocation6]  }
  0x17   :  { %s49_s14 = sshll.u32 %s627_s13, 4  ;;  %s50_s14 = int_to_ptr.vmem [resolvable:$true] %s49_s14 }
  0x18   :  { %s607_s15 = scalar_lea.vmem %s50_s14, 1024  ;;  %p612_p11 = scmp.lt.s32.totalorder %s50_s14, %s50_s14 }
  0x19   :  { %p608_p10 = scmp.ne.s32.totalorder %s50_s14, %s607_s15  ;;  %p613_p12 = scmp.lt.s32.totalorder %s607_s15, %s607_s15 }
  0x1b   :  { %p614_p13 = por %p613_p12, %p612_p11 }
  0x1d   :  { %p615_p0 = pnand %p614_p13, %p608_p10 }
  0x1f   :  { %618 = shalt.err (!%p615_p0)
}
  0x20   :  { %55 = dma.hbm_to_vmem [thread:$0]  %s729_s5, 1024, %s50_s14, [#allocation5], %s625_s29, %s625_s29, %s626_s30  }
  0x21   :  { %619 = dma.done.wait [#allocation3], 1024  }
  0x22   :  { %620 = vsyncadd [#allocation3], 4294966272 }
  0x23   :  { %621 = dma.done.wait [#allocation5], 2048  }
  0x24   :  { %622 = vsyncadd [#allocation5], 4294965248  ;;  %v628_v0 = vmov 0.0   ;;  %vm629_vm0 = vmmov 0   ;;  %v535_v1 = vld [vmem:[#allocation2 + $0x38] sm:$0xff]   ;;  %v536_v2 = vld [vmem:[#allocation2 + $0x30] sm:$0xff]  }
  0x25   :  { %468 = vmatprep.subr.bf16.mxu0 %v628_v0  ;;  %484 = vmatprep.mubr.msk.bf16.mxu0 %vm629_vm0, %v628_v0  ;;  %v537_v3 = vld [vmem:[#allocation2 + $0x28] sm:$0xff]   ;;  %v543_v4 = vld [vmem:[#allocation4 + $0x38] sm:$0xff]   ;;  %v538_v5 = vld [vmem:[#allocation2 + $0x20] sm:$0xff]  }
  0x26   :  { %488 = vmatprep.subr.bf16.mxu1 %v628_v0  ;;  %504 = vmatprep.mubr.msk.bf16.mxu1 %vm629_vm0, %v628_v0  ;;  %v544_v6 = vld [vmem:[#allocation4 + $0x30] sm:$0xff]   ;;  %v539_v7 = vld [vmem:[#allocation2 + $0x18] sm:$0xff]   ;;  %v545_v8 = vld [vmem:[#allocation4 + $0x28] sm:$0xff]  }
  0x27   :  { %469 = vmatpush3.bf16.msra.mxu0 %v535_v1  ;;  %489 = vmatpush3.bf16.msra.mxu1 %v543_v4  ;;  %v540_v9 = vld [vmem:[#allocation2 + $0x10] sm:$0xff]   ;;  %v546_v10 = vld [vmem:[#allocation4 + $0x20] sm:$0xff]   ;;  %v541_v11 = vld [vmem:[#allocation2 + $0x8] sm:$0xff]  }
  0x28   :  { %470 = vmatprep.subr.bf16.mxu0 %v628_v0  ;;  %490 = vmatprep.subr.bf16.mxu1 %v628_v0  ;;  %v547_v12 = vld [vmem:[#allocation4 + $0x18] sm:$0xff]   ;;  %v542_v13 = vld [vmem:[#allocation2] sm:$0xff]   ;;  %v548_v15 = vld [vmem:[#allocation4 + $0x10] sm:$0xff]  }
  0x29   :  { %v68_v14 = vld [vmem:[%s724_s0] sm:$0xff]  ;;  %v549_v17 = vld [vmem:[#allocation4 + $0x8] sm:$0xff]   ;;  %v551_v19 = vld [vmem:[#allocation6 + $0x38] sm:$0xff]  }
  0x2a   :  { %v69_v16 = vpack.c.bf16 %v68_v14, %v68_v14  ;;  %v550_v18 = vld [vmem:[#allocation4] sm:$0xff]   ;;  %v552_v20 = vld [vmem:[#allocation6 + $0x30] sm:$0xff]   ;;  %v553_v21 = vld [vmem:[#allocation6 + $0x28] sm:$0xff]  }
  0x2b   :  { %471 = vmatpush3.bf16.msra.mxu0 %v536_v2  ;;  %491 = vmatpush3.bf16.msra.mxu1 %v544_v6  ;;  %v554_v22 = vld [vmem:[#allocation6 + $0x20] sm:$0xff]   ;;  %v555_v23 = vld [vmem:[#allocation6 + $0x18] sm:$0xff]   ;;  %v556_v24 = vld [vmem:[#allocation6 + $0x10] sm:$0xff]  }
  0x2c   :  { %472 = vmatprep.subr.bf16.mxu0 %v628_v0  ;;  %492 = vmatprep.subr.bf16.mxu1 %v628_v0  ;;  %v414_v25 = vld [vmem:[%s726_s2] ss:$0 sm:$0xff]  ;;  %v557_v33 = vld [vmem:[#allocation6 + $0x8] sm:$0xff]  }
  0x2d   :  { %v558_v34 = vld [vmem:[#allocation6] sm:$0xff]  }
  0x2e   :  { %v423_v35 = vld [vmem:[%s728_s4] ss:$0 sm:$0xff] }
  0x2f   :  { %473 = vmatpush3.bf16.msra.mxu0 %v537_v3  ;;  %493 = vmatpush3.bf16.msra.mxu1 %v545_v8  ;;  %v432_v43 = vld [vmem:[%s730_s6] ss:$0 sm:$0xff] }
  0x30   :  { %474 = vmatprep.subr.bf16.mxu0 %v628_v0  ;;  %494 = vmatprep.subr.bf16.mxu1 %v628_v0 }
  0x33   :  { %475 = vmatpush3.bf16.msra.mxu0 %v538_v5  ;;  %495 = vmatpush3.bf16.msra.mxu1 %v546_v10 }
  0x34   :  { %476 = vmatprep.subr.bf16.mxu0 %v628_v0  ;;  %496 = vmatprep.subr.bf16.mxu1 %v628_v0 }
  0x37   :  { %477 = vmatpush3.bf16.msra.mxu0 %v539_v7  ;;  %497 = vmatpush3.bf16.msra.mxu1 %v547_v12 }
  0x38   :  { %478 = vmatprep.subr.bf16.mxu0 %v628_v0  ;;  %498 = vmatprep.subr.bf16.mxu1 %v628_v0 }
  0x3b   :  { %479 = vmatpush3.bf16.msra.mxu0 %v540_v9  ;;  %499 = vmatpush3.bf16.msra.mxu1 %v548_v15 }
  0x3c   :  { %480 = vmatprep.subr.bf16.mxu0 %v628_v0  ;;  %500 = vmatprep.subr.bf16.mxu1 %v628_v0 }
  0x3f   :  { %481 = vmatpush3.bf16.msra.mxu0 %v541_v11  ;;  %501 = vmatpush3.bf16.msra.mxu1 %v549_v17 }
  0x40   :  { %482 = vmatprep.subr.bf16.mxu0 %v628_v0  ;;  %502 = vmatprep.subr.bf16.mxu1 %v628_v0 }
  0x43   :  { %483 = vmatpush3.bf16.msra.mxu0 %v542_v13  ;;  %503 = vmatpush3.bf16.msra.mxu1 %v550_v18 }
  0x44   :  { %508 = vmatprep.subr.bf16.mxu0 %v628_v0 }
  0x46   :  { %485 = vmatmul.mubr.bf16.vlgmr.msra.gmra.mxu0 %v69_v16 }
  0x47   :  { %524 = vmatprep.mubr.msk.bf16.mxu0 %vm629_vm0, %v628_v0  ;;  %509 = vmatpush3.bf16.msra.mxu0 %v551_v19 }
  0x48   :  { %510 = vmatprep.subr.bf16.mxu0 %v628_v0 }
  0x4b   :  { %511 = vmatpush3.bf16.msra.mxu0 %v552_v20 }
  0x4c   :  { %512 = vmatprep.subr.bf16.mxu0 %v628_v0 }
  0x4f   :  { %513 = vmatpush3.bf16.msra.mxu0 %v553_v21 }
  0x50   :  { %514 = vmatprep.subr.bf16.mxu0 %v628_v0 }
  0x53   :  { %515 = vmatpush3.bf16.msra.mxu0 %v554_v22 }
  0x54   :  { %516 = vmatprep.subr.bf16.mxu0 %v628_v0 }
  0x57   :  { %517 = vmatpush3.bf16.msra.mxu0 %v555_v23 }
  0x58   :  { %518 = vmatprep.subr.bf16.mxu0 %v628_v0 }
  0x5b   :  { %519 = vmatpush3.bf16.msra.mxu0 %v556_v24 }
  0x5c   :  { %520 = vmatprep.subr.bf16.mxu0 %v628_v0 }
  0x5f   :  { %521 = vmatpush3.bf16.msra.mxu0 %v557_v33 }
  0x60   :  { %522 = vmatprep.subr.bf16.mxu0 %v628_v0 }
  0x63   :  { %523 = vmatpush3.bf16.msra.mxu0 %v558_v34 }
 0x106   :  { %v175_v26 = vpop.f32.mrf.mxu0 }
 0x107   :  { %v176_v27 = vadd.f32 %v414_v25, %v175_v26 }
 0x108   :  { %v486_v28 = vpop.f32.mrf.mxu0 }
 0x109   :  { %v181_v29 = vmax.f32 %v176_v27, 0.0 }
 0x10a   :  { %v178_v30 = vpop.f32.mrf.mxu0 }
 0x10b   :  { %v182_v31 = vpack.c.bf16 %v181_v29, %v181_v29 }
 0x10c   :  { %v487_v32 = vpop.f32.mrf.mxu0 }
 0x10d   :  { %505 = vmatmul.mubr.bf16.vlgmr.msra.gmra.mxu1 %v182_v31 }
 0x1cd   :  { %v288_v36 = vpop.f32.mrf.mxu1 }
 0x1ce   :  { %v289_v37 = vadd.f32 %v423_v35, %v288_v36 }
 0x1cf   :  { %v506_v38 = vpop.f32.mrf.mxu1 }
 0x1d0   :  { %v294_v39 = vmax.f32 %v289_v37, 0.0 }
 0x1d1   :  { %v291_v40 = vpop.f32.mrf.mxu1 }
 0x1d2   :  { %v295_v41 = vpack.c.bf16 %v294_v39, %v294_v39 }
 0x1d3   :  { %v507_v42 = vpop.f32.mrf.mxu1 }
 0x1d4   :  { %525 = vmatmul.mubr.bf16.vlgmr.msra.gmra.mxu0 %v295_v41 }
 0x294   :  { %v401_v44 = vpop.f32.mrf.mxu0 }
 0x295   :  { %v402_v45 = vadd.f32 %v432_v43, %v401_v44 }
 0x296   :  { %v526_v46 = vpop.f32.mrf.mxu0 }
 0x297   :  { %407 = vst [vmem:[%s731_s7] sm:$0xff] %v402_v45 }
 0x298   :  { %v404_v47 = vpop.f32.mrf.mxu0 }
 0x29a   :  { %v527_v48 = vpop.f32.mrf.mxu0 }
 0x29b   :  { %412 = vsyncpa [#allocation3], 1 }
 0x29c   :  { %413 = vsyncpa [#allocation5], 1 }

</bundles_post_ra>
